<compile_context>
chip_gen: v7x
topology: tpu7x:2x2x1
jax: 0.10.0
libtpu: 0.0.40
codegen_flags: <defaults>
</compile_context>

<pallas_src>
import jax
import jax.numpy as jnp
from jax.experimental import pallas as pl
from jax.experimental.pallas import tpu as pltpu


_LANE = 128


def _round_up(x, m):
    return ((x + m - 1) // m) * m


def _vmem_physical_bytes():
    """Physical VMEM per TensorCore (128 MiB v5e/v6e, 64 MiB v7x)."""
    try:
        info = pltpu.get_tpu_info()
        for attr in ("vmem_capacity_bytes", "vmem_bytes", "vmem_size_bytes"):
            v = getattr(info, attr, None)
            if v:
                return int(v)
    except Exception:
        pass
    return 64 * 1024 * 1024  # conservative (v7x-sized) default


# --------------------------------------------------------------------------
# Plain-JAX glue (data-dependent gathers, tiny compute)
# --------------------------------------------------------------------------
def index_points(points, idx):
    """points: [B, S, C], idx: [B, ...] int -> [B, ..., C]"""
    return jax.vmap(lambda p, i: p[i])(points, idx)


def square_distance(src, dst):
    dist = -2.0 * jnp.matmul(src, jnp.transpose(dst, (0, 2, 1)))
    dist = dist + jnp.sum(src ** 2, -1)[:, :, None]
    dist = dist + jnp.sum(dst ** 2, -1)[:, None, :]
    return dist


# --------------------------------------------------------------------------
# Pallas kernel: fused MLP stack  y = relu(x @ W_l + b_l)  for l = 0..L-1
# (BN folded into W_l, b_l in the wrapper; all layers in one kernel body;
#  final activation written channels-major, points on lanes.)
# --------------------------------------------------------------------------
def _fused_mlp_kernel(x_ref, *refs):
    *wb_refs, o_ref = refs
    n_layers = len(wb_refs) // 2
    h = x_ref[...]                                     # bf16 (tile_m, cin_p)
    for l in range(n_layers):
        w = wb_refs[2 * l][...]                        # bf16 (cin_p_l, cout_p_l)
        b = wb_refs[2 * l + 1][...]                    # f32  (1, cout_p_l)
        h = jnp.dot(h, w, preferred_element_type=jnp.float32) + b
        h = jnp.maximum(h, 0.0)                        # bias + ReLU in f32
        if l + 1 < n_layers:
            h = h.astype(jnp.bfloat16)                 # narrow next MXU operand
    # Emit channels-major, lane-dense over points: (out_dim_8, tile_m).
    o_ref[...] = h.T[: o_ref.shape[0], :].astype(o_ref.dtype)


def fused_mlp(x, fused_w, fused_b, out_dim):
    """x: [M, cin_p] bf16 (cin_p multiple of 128).  Returns [out_dim, M] f32."""
    M, cin_p = x.shape
    out_dim_8 = _round_up(out_dim, 8)

    # ---- generation-aware, honest VMEM budget ----
    phys_vmem = _vmem_physical_bytes()
    vmem_limit = min(phys_vmem * 3 // 4, 96 * 1024 * 1024)

    weight_bytes = (sum(int(w.size) * w.dtype.itemsize for w in fused_w)
                    + sum(int(b.size) * b.dtype.itemsize for b in fused_b))

    chans_p = [cin_p] + [int(w.shape[1]) for w in fused_w]
    live_pair = max(chans_p[i] + chans_p[i + 1] for i in range(len(chans_p) - 1))
    # per-row bytes: double-buffered bf16 input tile + double-buffered f32
    # output tile (unpadded channels) + widest live f32 activation pair.
    per_row = 2 * cin_p * 2 + 2 * out_dim_8 * 4 + live_pair * 4
    headroom = 4 * 1024 * 1024
    # Count weights twice in case the single-buffer request is not honoured.
    budget = max(vmem_limit - 2 * weight_bytes - headroom, 2 * 1024 * 1024)

    tile_cap = 8192 if phys_vmem >= (100 << 20) else 2048   # v5e/v6e vs v7x
    tile_m = min(tile_cap, (budget // max(per_row, 1)) // _LANE * _LANE)
    tile_m = max(_LANE, tile_m)
    # Keep >=4 grid steps so the "parallel" axis can shard over 2 TCs (v7x).
    tile_m = min(tile_m, max(_LANE, _round_up(pl.cdiv(M, 4), _LANE)))
    # Re-pick so end-of-grid padding is bounded (<128 rows per tile).
    num_tiles = pl.cdiv(M, tile_m)
    tile_m = _round_up(pl.cdiv(M, num_tiles), _LANE)
    m_pad = num_tiles * tile_m

    if m_pad != M:
        x = jnp.pad(x, ((0, m_pad - M), (0, 0)))

    def run(weight_mode):
        in_specs = [pl.BlockSpec((tile_m, cin_p), lambda i: (i, 0))]
        args = [x]
        for w, b in zip(fused_w, fused_b):
            in_specs.append(pl.BlockSpec(w.shape, lambda i: (0, 0),
                                         pipeline_mode=weight_mode))
            in_specs.append(pl.BlockSpec(b.shape, lambda i: (0, 0),
                                         pipeline_mode=weight_mode))
            args.append(w)
            args.append(b)
        return pl.pallas_call(
            _fused_mlp_kernel,
            out_shape=jax.ShapeDtypeStruct((out_dim_8, m_pad), jnp.float32),
            grid=(num_tiles,),
            in_specs=in_specs,
            out_specs=pl.BlockSpec((out_dim_8, tile_m), lambda i: (0, i)),
            compiler_params=pltpu.CompilerParams(
                dimension_semantics=("parallel",),
                vmem_limit_bytes=int(vmem_limit)),
        )(*args)

    try:
        # Constant-index weight/bias blocks: single-buffer them, reclaim VMEM.
        out = run(pl.Buffered(1))
    except Exception:
        out = run(None)

    if out_dim_8 != out_dim or m_pad != M:
        out = out[:out_dim, :M]
    return out


# --------------------------------------------------------------------------
# Parameter handling: init mirrors the PyTorch module, BN folded in wrapper
# --------------------------------------------------------------------------
def init_params(key, in_channel, mlp):
    params = []
    last = in_channel
    for out_c in mlp:
        key, k1, k2 = jax.random.split(key, 3)
        bound = 1.0 / (last ** 0.5)          # PyTorch Conv1d default init
        w = jax.random.uniform(k1, (last, out_c), jnp.float32, -bound, bound)
        b = jax.random.uniform(k2, (out_c,), jnp.float32, -bound, bound)
        gamma = jnp.ones((out_c,), jnp.float32)
        beta = jnp.zeros((out_c,), jnp.float32)
        mean = jnp.zeros((out_c,), jnp.float32)   # BN running stats (eval)
        var = jnp.ones((out_c,), jnp.float32)
        params.append((w, b, gamma, beta, mean, var))
        last = out_c
    return params


def _fold_bn(w, b, gamma, beta, mean, var, eps=1e-5):
    """Fold eval-mode BatchNorm1d into the 1x1 conv: y = x@W_f + b_f."""
    scale = gamma * jax.lax.rsqrt(var + eps)
    w_f = w * scale[None, :]
    b_f = (b - mean) * scale + beta
    return w_f, b_f


def _pad_layer(w_f, b_f, cin_p, cout_p):
    w_p = jnp.zeros((cin_p, cout_p), jnp.float32)
    w_p = w_p.at[: w_f.shape[0], : w_f.shape[1]].set(w_f)
    b_p = jnp.zeros((1, cout_p), jnp.float32)
    b_p = b_p.at[0, : b_f.shape[0]].set(b_f)
    return w_p.astype(jnp.bfloat16), b_p


# --------------------------------------------------------------------------
# Full forward pass (mirrors PointNetFeaturePropagation.forward)
# --------------------------------------------------------------------------
def pointnet_feature_propagation(xyz1, xyz2, points1, points2, params):
    """xyz1: [B,C,N], xyz2: [B,C,S], points1: [B,D1,N] or None, points2: [B,D2,S]."""
    xyz1_t = jnp.transpose(xyz1, (0, 2, 1))        # [B, N, C]
    xyz2_t = jnp.transpose(xyz2, (0, 2, 1))        # [B, S, C]
    points2_t = jnp.transpose(points2, (0, 2, 1))  # [B, S, D2]
    B, N, _ = xyz1_t.shape
    S = xyz2_t.shape[1]
    D2 = points2_t.shape[-1]

    if S == 1:
        interpolated = jnp.broadcast_to(points2_t, (B, N, D2))
    else:
        dists = square_distance(xyz1_t, xyz2_t)             # [B, N, S]
        neg_d, idx = jax.lax.top_k(-dists, 3)                # 3 nearest
        d3 = jnp.maximum(-neg_d, 1e-10)                      # dists[dists<1e-10]=1e-10
        weight = 1.0 / d3
        weight = weight / jnp.sum(weight, axis=-1, keepdims=True)
        gathered = index_points(points2_t, idx)              # [B, N, 3, D2]
        interpolated = jnp.sum(gathered * weight[..., None], axis=2)

    if points1 is not None:
        points1_t = jnp.transpose(points1, (0, 2, 1))        # [B, N, D1]
        new_points = jnp.concatenate([points1_t, interpolated], axis=-1)
    else:
        new_points = interpolated

    B_, N_, cin = new_points.shape
    x = new_points.reshape(B_ * N_, cin)

    # Fold BN, pad channel dims to lane multiples (padded channels stay 0),
    # and move the MLP data path to bf16.
    chans = [cin] + [p[0].shape[1] for p in params]
    chans_p = [_round_up(c, _LANE) for c in chans]
    if chans_p[0] != cin:
        x = jnp.pad(x, ((0, 0), (0, chans_p[0] - cin)))
    x = x.astype(jnp.bfloat16)

    fused_w, fused_b = [], []
    for l, (w, b, gamma, beta, mean, var) in enumerate(params):
        w_f, b_f = _fold_bn(w, b, gamma, beta, mean, var)
        w_p, b_p = _pad_layer(w_f, b_f, chans_p[l], chans_p[l + 1])
        fused_w.append(w_p)
        fused_b.append(b_p)

    out = fused_mlp(x, fused_w, fused_b, out_dim=chans[-1])  # [D', B*N] f32
    out = out.reshape(chans[-1], B_, N_)
    return jnp.transpose(out, (1, 0, 2))                     # [B, D', N]


if __name__ == "__main__":
    B, N, S = 2, 16, 8
    C = 3
    D1, D2 = 4, 6
    mlp = [32, 16]
    in_channel = D1 + D2

    key = jax.random.PRNGKey(0)
    k1, k2, k3, k4, kw = jax.random.split(key, 5)
    xyz1 = jax.random.normal(k1, (B, C, N), jnp.float32)
    xyz2 = jax.random.normal(k2, (B, C, S), jnp.float32)
    points1 = jax.random.normal(k3, (B, D1, N), jnp.float32)
    points2 = jax.random.normal(k4, (B, D2, S), jnp.float32)
    params = init_params(kw, in_channel, mlp)

    out = pointnet_feature_propagation(xyz1, xyz2, points1, points2, params)
    jax.block_until_ready(out)
    assert out.shape == (B, mlp[-1], N)
    print("KERNEL_OK")
</pallas_src>

<mosaic_0001>
module attributes {stable_mosaic.version = 11 : i64} {
  func.func @_fused_mlp_kernel(%arg0: i32, %arg1: memref<128x128xbf16, #tpu.memory_space<vmem>>, %arg2: memref<128x128xbf16, #tpu.memory_space<vmem>>, %arg3: memref<1x128xf32, #tpu.memory_space<vmem>>, %arg4: memref<128x128xbf16, #tpu.memory_space<vmem>>, %arg5: memref<1x128xf32, #tpu.memory_space<vmem>>, %arg6: memref<16x128xf32, #tpu.memory_space<vmem>>) attributes {dimension_semantics = [#tpu.dimension_semantics<parallel>], iteration_bounds = array<i64: 1>, scalar_prefetch = 0 : i64, scratch_operands = 0 : i64, tpu.core_type = #tpu.core_type<tc>, window_params = [{transform_indices = @transform_0, window_bounds = array<i64: 128, 128>}, {pipeline_mode = #tpu.pipeline_mode<synchronous>, transform_indices = @transform_1, window_bounds = array<i64: 128, 128>}, {pipeline_mode = #tpu.pipeline_mode<synchronous>, transform_indices = @transform_2, window_bounds = array<i64: 1, 128>}, {pipeline_mode = #tpu.pipeline_mode<synchronous>, transform_indices = @transform_3, window_bounds = array<i64: 128, 128>}, {pipeline_mode = #tpu.pipeline_mode<synchronous>, transform_indices = @transform_4, window_bounds = array<i64: 1, 128>}, {transform_indices = @transform_5, window_bounds = array<i64: 16, 128>}]} {
    %c0 = arith.constant 0 : index
    %c0_0 = arith.constant 0 : index
    %0 = vector.load %arg1[%c0, %c0_0] : memref<128x128xbf16, #tpu.memory_space<vmem>>, vector<128x128xbf16>
    %c0_1 = arith.constant 0 : index
    %c0_2 = arith.constant 0 : index
    %1 = vector.load %arg2[%c0_1, %c0_2] : memref<128x128xbf16, #tpu.memory_space<vmem>>, vector<128x128xbf16>
    %c0_3 = arith.constant 0 : index
    %c0_4 = arith.constant 0 : index
    %2 = vector.load %arg3[%c0_3, %c0_4] : memref<1x128xf32, #tpu.memory_space<vmem>>, vector<1x128xf32>
    %cst = arith.constant dense<0.000000e+00> : vector<128x128xf32>
    %3 = tpu.matmul %0, %1, %cst {dimension_numbers = #tpu.dot_dimension_numbers<[1], [0], [0], [1], [0, 0, 1, 1], [], []>} : vector<128x128xbf16>, vector<128x128xbf16>, vector<128x128xf32> -> vector<128x128xf32>
    %4 = vector.broadcast %2 : vector<1x128xf32> to vector<128x128xf32>
    %5 = arith.addf %3, %4 : vector<128x128xf32>
    %cst_5 = arith.constant 0.000000e+00 : f32
    %6 = vector.broadcast %cst_5 : f32 to vector<128x128xf32>
    %7 = arith.maximumf %5, %6 : vector<128x128xf32>
    %8 = arith.truncf %7 : vector<128x128xf32> to vector<128x128xbf16>
    %c0_6 = arith.constant 0 : index
    %c0_7 = arith.constant 0 : index
    %9 = vector.load %arg4[%c0_6, %c0_7] : memref<128x128xbf16, #tpu.memory_space<vmem>>, vector<128x128xbf16>
    %c0_8 = arith.constant 0 : index
    %c0_9 = arith.constant 0 : index
    %10 = vector.load %arg5[%c0_8, %c0_9] : memref<1x128xf32, #tpu.memory_space<vmem>>, vector<1x128xf32>
    %cst_10 = arith.constant dense<0.000000e+00> : vector<128x128xf32>
    %11 = tpu.matmul %8, %9, %cst_10 {dimension_numbers = #tpu.dot_dimension_numbers<[1], [0], [0], [1], [0, 0, 1, 1], [], []>} : vector<128x128xbf16>, vector<128x128xbf16>, vector<128x128xf32> -> vector<128x128xf32>
    %12 = vector.broadcast %10 : vector<1x128xf32> to vector<128x128xf32>
    %13 = arith.addf %11, %12 : vector<128x128xf32>
    %cst_11 = arith.constant 0.000000e+00 : f32
    %14 = vector.broadcast %cst_11 : f32 to vector<128x128xf32>
    %15 = arith.maximumf %13, %14 : vector<128x128xf32>
    %16 = tpu.transpose %15, [1, 0] : vector<128x128xf32> -> vector<128x128xf32>
    %17 = vector.extract_strided_slice %16 {offsets = [0, 0], sizes = [16, 128], strides = [1, 1]} : vector<128x128xf32> to vector<16x128xf32>
    %c0_12 = arith.constant 0 : index
    %c0_13 = arith.constant 0 : index
    %18 = vector.load %arg6[%c0_12, %c0_13] : memref<16x128xf32, #tpu.memory_space<vmem>>, vector<16x128xf32>
    tpu.vector_store %arg6[%c0_12, %c0_13], %17 {strides = array<i32>} : memref<16x128xf32, #tpu.memory_space<vmem>>, vector<16x128xf32>,
    return
  }
  func.func @transform_0(%arg0: i32) -> (i32, i32) {
    %c0_i32 = arith.constant 0 : i32
    %c0_i32_0 = arith.constant 0 : i32
    return %arg0, %c0_i32 : i32, i32
  }
  func.func @transform_1(%arg0: i32) -> (i32, i32) {
    %c0_i32 = arith.constant 0 : i32
    %c0_i32_0 = arith.constant 0 : i32
    %c0_i32_1 = arith.constant 0 : i32
    return %c0_i32, %c0_i32_0 : i32, i32
  }
  func.func @transform_2(%arg0: i32) -> (i32, i32) {
    %c0_i32 = arith.constant 0 : i32
    %c0_i32_0 = arith.constant 0 : i32
    %c0_i32_1 = arith.constant 0 : i32
    return %c0_i32, %c0_i32_0 : i32, i32
  }
  func.func @transform_3(%arg0: i32) -> (i32, i32) {
    %c0_i32 = arith.constant 0 : i32
    %c0_i32_0 = arith.constant 0 : i32
    %c0_i32_1 = arith.constant 0 : i32
    return %c0_i32, %c0_i32_0 : i32, i32
  }
  func.func @transform_4(%arg0: i32) -> (i32, i32) {
    %c0_i32 = arith.constant 0 : i32
    %c0_i32_0 = arith.constant 0 : i32
    %c0_i32_1 = arith.constant 0 : i32
    return %c0_i32, %c0_i32_0 : i32, i32
  }
  func.func @transform_5(%arg0: i32) -> (i32, i32) {
    %c0_i32 = arith.constant 0 : i32
    %c0_i32_0 = arith.constant 0 : i32
    return %c0_i32, %arg0 : i32, i32
  }
}

module attributes {stable_mosaic.version = 11 : i64} {
  func.func @_fused_mlp_kernel(%arg0: i32, %arg1: memref<128x128xbf16, #tpu.memory_space<vmem>>, %arg2: memref<128x128xbf16, #tpu.memory_space<vmem>>, %arg3: memref<1x128xf32, #tpu.memory_space<vmem>>, %arg4: memref<128x128xbf16, #tpu.memory_space<vmem>>, %arg5: memref<1x128xf32, #tpu.memory_space<vmem>>, %arg6: memref<16x128xf32, #tpu.memory_space<vmem>>) attributes {dimension_semantics = [#tpu.dimension_semantics<parallel>], iteration_bounds = array<i64: 1>, scalar_prefetch = 0 : i64, scratch_operands = 0 : i64, tpu.core_type = #tpu.core_type<tc>, window_params = [{transform_indices = @transform_0, window_bounds = array<i64: 128, 128>}, {pipeline_mode = #tpu.pipeline_mode<synchronous>, transform_indices = @transform_1, window_bounds = array<i64: 128, 128>}, {pipeline_mode = #tpu.pipeline_mode<synchronous>, transform_indices = @transform_2, window_bounds = array<i64: 1, 128>}, {pipeline_mode = #tpu.pipeline_mode<synchronous>, transform_indices = @transform_3, window_bounds = array<i64: 128, 128>}, {pipeline_mode = #tpu.pipeline_mode<synchronous>, transform_indices = @transform_4, window_bounds = array<i64: 1, 128>}, {transform_indices = @transform_5, window_bounds = array<i64: 16, 128>}]} {
    %c0 = arith.constant 0 : index
    %c0_0 = arith.constant 0 : index
    %0 = vector.load %arg1[%c0, %c0_0] : memref<128x128xbf16, #tpu.memory_space<vmem>>, vector<128x128xbf16>
    %c0_1 = arith.constant 0 : index
    %c0_2 = arith.constant 0 : index
    %1 = vector.load %arg2[%c0_1, %c0_2] : memref<128x128xbf16, #tpu.memory_space<vmem>>, vector<128x128xbf16>
    %c0_3 = arith.constant 0 : index
    %c0_4 = arith.constant 0 : index
    %2 = vector.load %arg3[%c0_3, %c0_4] : memref<1x128xf32, #tpu.memory_space<vmem>>, vector<1x128xf32>
    %cst = arith.constant dense<0.000000e+00> : vector<128x128xf32>
    %3 = tpu.matmul %0, %1, %cst {dimension_numbers = #tpu.dot_dimension_numbers<[1], [0], [0], [1], [0, 0, 1, 1], [], []>} : vector<128x128xbf16>, vector<128x128xbf16>, vector<128x128xf32> -> vector<128x128xf32>
    %4 = vector.broadcast %2 : vector<1x128xf32> to vector<128x128xf32>
    %5 = arith.addf %3, %4 : vector<128x128xf32>
    %cst_5 = arith.constant 0.000000e+00 : f32
    %6 = vector.broadcast %cst_5 : f32 to vector<128x128xf32>
    %7 = arith.maximumf %5, %6 : vector<128x128xf32>
    %8 = arith.truncf %7 : vector<128x128xf32> to vector<128x128xbf16>
    %c0_6 = arith.constant 0 : index
    %c0_7 = arith.constant 0 : index
    %9 = vector.load %arg4[%c0_6, %c0_7] : memref<128x128xbf16, #tpu.memory_space<vmem>>, vector<128x128xbf16>
    %c0_8 = arith.constant 0 : index
    %c0_9 = arith.constant 0 : index
    %10 = vector.load %arg5[%c0_8, %c0_9] : memref<1x128xf32, #tpu.memory_space<vmem>>, vector<1x128xf32>
    %cst_10 = arith.constant dense<0.000000e+00> : vector<128x128xf32>
    %11 = tpu.matmul %8, %9, %cst_10 {dimension_numbers = #tpu.dot_dimension_numbers<[1], [0], [0], [1], [0, 0, 1, 1], [], []>} : vector<128x128xbf16>, vector<128x128xbf16>, vector<128x128xf32> -> vector<128x128xf32>
    %12 = vector.broadcast %10 : vector<1x128xf32> to vector<128x128xf32>
    %13 = arith.addf %11, %12 : vector<128x128xf32>
    %cst_11 = arith.constant 0.000000e+00 : f32
    %14 = vector.broadcast %cst_11 : f32 to vector<128x128xf32>
    %15 = arith.maximumf %13, %14 : vector<128x128xf32>
    %16 = tpu.transpose %15, [1, 0] : vector<128x128xf32> -> vector<128x128xf32>
    %17 = vector.extract_strided_slice %16 {offsets = [0, 0], sizes = [16, 128], strides = [1, 1]} : vector<128x128xf32> to vector<16x128xf32>
    %c0_12 = arith.constant 0 : index
    %c0_13 = arith.constant 0 : index
    %18 = vector.load %arg6[%c0_12, %c0_13] : memref<16x128xf32, #tpu.memory_space<vmem>>, vector<16x128xf32>
    tpu.vector_store %arg6[%c0_12, %c0_13], %17 {strides = array<i32>} : memref<16x128xf32, #tpu.memory_space<vmem>>, vector<16x128xf32>,
    return
  }
  func.func @transform_0(%arg0: i32) -> (i32, i32) {
    %c0_i32 = arith.constant 0 : i32
    %c0_i32_0 = arith.constant 0 : i32
    return %arg0, %c0_i32 : i32, i32
  }
  func.func @transform_1(%arg0: i32) -> (i32, i32) {
    %c0_i32 = arith.constant 0 : i32
    %c0_i32_0 = arith.constant 0 : i32
    %c0_i32_1 = arith.constant 0 : i32
    return %c0_i32, %c0_i32_0 : i32, i32
  }
  func.func @transform_2(%arg0: i32) -> (i32, i32) {
    %c0_i32 = arith.constant 0 : i32
    %c0_i32_0 = arith.constant 0 : i32
    %c0_i32_1 = arith.constant 0 : i32
    return %c0_i32, %c0_i32_0 : i32, i32
  }
  func.func @transform_3(%arg0: i32) -> (i32, i32) {
    %c0_i32 = arith.constant 0 : i32
    %c0_i32_0 = arith.constant 0 : i32
    %c0_i32_1 = arith.constant 0 : i32
    return %c0_i32, %c0_i32_0 : i32, i32
  }
  func.func @transform_4(%arg0: i32) -> (i32, i32) {
    %c0_i32 = arith.constant 0 : i32
    %c0_i32_0 = arith.constant 0 : i32
    %c0_i32_1 = arith.constant 0 : i32
    return %c0_i32, %c0_i32_0 : i32, i32
  }
  func.func @transform_5(%arg0: i32) -> (i32, i32) {
    %c0_i32 = arith.constant 0 : i32
    %c0_i32_0 = arith.constant 0 : i32
    return %c0_i32, %arg0 : i32, i32
  }
}

</mosaic_0001>

<bundles_post_ra>
// kernel: tpu_custom_call.1
= control target key start
LH: loop header
LB: loop body
LE: loop exit
PB: predicated region body
PF: predicated region fallthrough
CT: control target
= control target key end

     0   :  { %10 = vsyncpa [#allocation3], 0  ;;  %s911_s0 = inlined_call_operand.hbm [shape: bf16[128,128], index: 0, kind: input, shape index: {}]   ;;  %s912_s1 = inlined_call_operand.hbm [shape: bf16[128,128], index: 1, kind: input, shape index: {}]   ;;  %s913_s2 = inlined_call_operand.vmem [shape: f32[1,128], index: 2, kind: input, shape index: {}]   ;;  %s914_s3 = inlined_call_operand.hbm [shape: bf16[128,128], index: 3, kind: input, shape index: {}]   ;;  %s915_s4 = inlined_call_operand.vmem [shape: f32[1,128], index: 4, kind: input, shape index: {}]   ;;  %s916_s5 = inlined_call_operand.hbm [shape: f32[16,128], index: 5, kind: output, shape index: {}]  }
   0x1   :  { %11 = vsyncpa [#allocation6], 0 }
   0x2   :  { %12 = vsyncpa [#allocation4], 0  ;;  %s803_s18 = smov [#allocation5]   ;;  %s804_s20 = smov [#allocation2]  }
   0x3   :  { %s30_s19 = sshll.u32 %s803_s18, 4  ;;  %s18_s21 = sshll.u32 %s804_s20, 4  ;;  %s31_s19 = int_to_ptr.vmem [resolvable:$true] %s30_s19  ;;  %s841_s21 = int_to_ptr.vmem [resolvable:$true] %s18_s21 }
   0x4   :  { %s709_s24 = scalar_lea.hbm %s912_s1, 1024 }
   0x5   :  { %p710_p0 = scmp.ne.s32.totalorder %s912_s1, %s709_s24  ;;  %p713_p1 = scmp.lt.u32.totalorder %s709_s24, %s912_s1 }
   0x7   :  { %p715_p2 = pnand %p713_p1, %p710_p0 }
   0x9   :  { %718 = shalt.err (!%p715_p2)
}
   0xa   :  { %s719_s29 = scalar_lea.vmem %s31_s19, 1024  ;;  %p724_p4 = scmp.lt.s32.totalorder %s31_s19, %s31_s19 }
   0xb   :  { %p720_p3 = scmp.ne.s32.totalorder %s31_s19, %s719_s29  ;;  %p725_p5 = scmp.lt.s32.totalorder %s719_s29, %s719_s29 }
   0xd   :  { %p726_p6 = por %p725_p5, %p724_p4 }
   0xf   :  { %p727_p7 = pnand %p726_p6, %p720_p3 }
  0x11   :  { %730 = shalt.err (!%p727_p7)
}
  0x12   :  { %s805_s30 = smov 64   ;;  %s806_s6 = smov 4  }
  0x13   :  { %36 = dma.hbm_to_vmem [thread:$0]  %s912_s1, 1024, %s31_s19, [#allocation6], %s805_s30, %s805_s30, %s806_s6  }
  0x14   :  { %s731_s11 = scalar_lea.hbm %s911_s0, 1024 }
  0x15   :  { %p732_p8 = scmp.ne.s32.totalorder %s911_s0, %s731_s11  ;;  %p735_p9 = scmp.lt.u32.totalorder %s731_s11, %s911_s0 }
  0x17   :  { %p737_p10 = pnand %p735_p9, %p732_p8 }
  0x19   :  { %740 = shalt.err (!%p737_p10)
}
  0x1a   :  { %s741_s16 = scalar_lea.vmem %s841_s21, 1024  ;;  %p746_p12 = scmp.lt.s32.totalorder %s841_s21, %s841_s21 }
  0x1b   :  { %p742_p11 = scmp.ne.s32.totalorder %s841_s21, %s741_s16  ;;  %p747_p13 = scmp.lt.s32.totalorder %s741_s16, %s741_s16 }
  0x1d   :  { %p748_p0 = por %p747_p13, %p746_p12 }
  0x1f   :  { %p749_p1 = pnand %p748_p0, %p742_p11 }
  0x21   :  { %752 = shalt.err (!%p749_p1)
}
  0x22   :  { %24 = dma.hbm_to_vmem [thread:$0]  %s911_s0, 1024, %s841_s21, [#allocation3], %s805_s30, %s805_s30, %s806_s6  }
  0x23   :  { %s807_s18 = smov [#allocation7]   ;;  %s753_s23 = scalar_lea.hbm %s914_s3, 1024 }
  0x24   :  { %s44_s19 = sshll.u32 %s807_s18, 4  ;;  %p754_p2 = scmp.ne.s32.totalorder %s914_s3, %s753_s23  ;;  %s45_s19 = int_to_ptr.vmem [resolvable:$true] %s44_s19 }
  0x25   :  { %p757_p3 = scmp.lt.u32.totalorder %s753_s23, %s914_s3 }
  0x27   :  { %p759_p4 = pnand %p757_p3, %p754_p2 }
  0x29   :  { %762 = shalt.err (!%p759_p4)
}
  0x2a   :  { %s763_s28 = scalar_lea.vmem %s45_s19, 1024  ;;  %p768_p6 = scmp.lt.s32.totalorder %s45_s19, %s45_s19 }
  0x2b   :  { %p764_p5 = scmp.ne.s32.totalorder %s45_s19, %s763_s28  ;;  %p769_p7 = scmp.lt.s32.totalorder %s763_s28, %s763_s28 }
  0x2d   :  { %p770_p8 = por %p769_p7, %p768_p6 }
  0x2f   :  { %p771_p9 = pnand %p770_p8, %p764_p5 }
  0x31   :  { %774 = shalt.err (!%p771_p9)
}
  0x32   :  { %50 = dma.hbm_to_vmem [thread:$0]  %s914_s3, 1024, %s45_s19, [#allocation6], %s805_s30, %s805_s30, %s806_s6  }
  0x33   :  { %797 = dma.done.wait [#allocation3], 1024  }
  0x34   :  { %798 = vsyncadd [#allocation3], 4294966272 }
  0x35   :  { %799 = dma.done.wait [#allocation6], 2048  }
  0x36   :  { %800 = vsyncadd [#allocation6], 4294965248  ;;  %v685_v0 = vld [vmem:[#allocation5] sm:$0xff]   ;;  %v686_v1 = vld [vmem:[#allocation5 + $0x8] sm:$0xff]  }
  0x37   :  { %613 = vmatprep.subr.bf16.mxu0 %v685_v0  ;;  %v687_v2 = vld [vmem:[#allocation5 + $0x10] sm:$0xff]   ;;  %v688_v3 = vld [vmem:[#allocation5 + $0x18] sm:$0xff]   ;;  %v693_v4 = vld [vmem:[#allocation2] sm:$0xff]  }
  0x38   :  { %614 = vmatpush3.bf16.msra.mxu0 %v685_v0  ;;  %629 = vmatprep.mubr.bf16.mxu0 %v693_v4  ;;  %v689_v5 = vld [vmem:[#allocation5 + $0x20] sm:$0xff]   ;;  %v690_v6 = vld [vmem:[#allocation5 + $0x28] sm:$0xff]   ;;  %v691_v9 = vld [vmem:[#allocation5 + $0x30] sm:$0xff]  }
  0x39   :  { %615 = vmatprep.subr.bf16.mxu0 %v686_v1  ;;  %v701_v7 = vld [vmem:[#allocation7] sm:$0xff]   ;;  %v702_v8 = vld [vmem:[#allocation7 + $0x8] sm:$0xff]   ;;  %v703_v10 = vld [vmem:[#allocation7 + $0x10] sm:$0xff]  }
  0x3a   :  { %645 = vmatprep.subr.bf16.mxu1 %v701_v7  ;;  %v692_v11 = vld [vmem:[#allocation5 + $0x38] sm:$0xff]   ;;  %v705_v13 = vld [vmem:[#allocation7 + $0x20] sm:$0xff]   ;;  %v694_v14 = vld [vmem:[#allocation2 + $0x8] sm:$0xff]  }
  0x3b   :  { %646 = vmatpush3.bf16.msra.mxu1 %v701_v7  ;;  %v704_v12 = vld [vmem:[#allocation7 + $0x18] sm:$0xff]   ;;  %v695_v15 = vld [vmem:[#allocation2 + $0x10] sm:$0xff]   ;;  %v706_v16 = vld [vmem:[#allocation7 + $0x28] sm:$0xff]  }
  0x3c   :  { %616 = vmatpush3.bf16.msra.mxu0 %v686_v1  ;;  %647 = vmatprep.subr.bf16.mxu1 %v702_v8  ;;  %v696_v17 = vld [vmem:[#allocation2 + $0x18] sm:$0xff]   ;;  %v697_v18 = vld [vmem:[#allocation2 + $0x20] sm:$0xff]   ;;  %v698_v19 = vld [vmem:[#allocation2 + $0x28] sm:$0xff]  }
  0x3d   :  { %617 = vmatprep.subr.bf16.mxu0 %v687_v2  ;;  %v699_v20 = vld [vmem:[#allocation2 + $0x30] sm:$0xff]   ;;  %v700_v21 = vld [vmem:[#allocation2 + $0x38] sm:$0xff]   ;;  %v555_v24 = vld [vmem:[%s913_s2] ss:$0 sm:$0xff] }
  0x3e   :  { %v707_v22 = vld [vmem:[#allocation7 + $0x30] sm:$0xff]   ;;  %v708_v23 = vld [vmem:[#allocation7 + $0x38] sm:$0xff]  }
  0x3f   :  { %648 = vmatpush3.bf16.msra.mxu1 %v702_v8 }
  0x40   :  { %618 = vmatpush3.bf16.msra.mxu0 %v687_v2  ;;  %649 = vmatprep.subr.bf16.mxu1 %v703_v10 }
  0x41   :  { %619 = vmatprep.subr.bf16.mxu0 %v688_v3 }
  0x43   :  { %650 = vmatpush3.bf16.msra.mxu1 %v703_v10 }
  0x44   :  { %620 = vmatpush3.bf16.msra.mxu0 %v688_v3  ;;  %651 = vmatprep.subr.bf16.mxu1 %v704_v12 }
  0x45   :  { %621 = vmatprep.subr.bf16.mxu0 %v689_v5 }
  0x47   :  { %652 = vmatpush3.bf16.msra.mxu1 %v704_v12 }
  0x48   :  { %622 = vmatpush3.bf16.msra.mxu0 %v689_v5  ;;  %653 = vmatprep.subr.bf16.mxu1 %v705_v13 }
  0x49   :  { %623 = vmatprep.subr.bf16.mxu0 %v690_v6 }
  0x4b   :  { %654 = vmatpush3.bf16.msra.mxu1 %v705_v13 }
  0x4c   :  { %624 = vmatpush3.bf16.msra.mxu0 %v690_v6  ;;  %655 = vmatprep.subr.bf16.mxu1 %v706_v16 }
  0x4d   :  { %625 = vmatprep.subr.bf16.mxu0 %v691_v9 }
  0x4f   :  { %656 = vmatpush3.bf16.msra.mxu1 %v706_v16 }
  0x50   :  { %626 = vmatpush3.bf16.msra.mxu0 %v691_v9  ;;  %657 = vmatprep.subr.bf16.mxu1 %v707_v22 }
  0x51   :  { %627 = vmatprep.subr.bf16.mxu0 %v692_v11 }
  0x53   :  { %658 = vmatpush3.bf16.msra.mxu1 %v707_v22 }
  0x54   :  { %628 = vmatpush3.bf16.msra.mxu0 %v692_v11  ;;  %659 = vmatprep.subr.bf16.mxu1 %v708_v23 }
  0x57   :  { %630 = vmatmul.mubr.bf16.vlgmr.msra.gmra.mrb[0].mxu0 %v694_v14  ;;  %660 = vmatpush3.bf16.msra.mxu1 %v708_v23 }
  0x58   :  { %633 = vmatprep.mubr.bf16.mxu0 %v695_v15 }
  0x5f   :  { %634 = vmatmul.mubr.bf16.gmra.mrb[4].mxu0 %v696_v17  ;;  %v572_v17 = vld [vmem:[%s915_s4] ss:$0 sm:$0xff]  ;;  %s808_s4 = smov [#allocation8]  }
  0x60   :  { %637 = vmatprep.mubr.bf16.mxu0 %v697_v18  ;;  %s542_s6 = sshll.u32 %s808_s4, 4  ;;  %s543_s6 = int_to_ptr.vmem [resolvable:$true] %s542_s6 }
  0x61   :  { %s775_s7 = scalar_lea.vmem %s543_s6, 256  ;;  %p780_p11 = scmp.lt.s32.totalorder %s543_s6, %s543_s6 }
  0x62   :  { %p776_p10 = scmp.ne.s32.totalorder %s543_s6, %s775_s7  ;;  %p781_p12 = scmp.lt.s32.totalorder %s775_s7, %s775_s7 }
  0x64   :  { %p782_p13 = por %p781_p12, %p780_p11 }
  0x66   :  { %p783_p0 = pnand %p782_p13, %p776_p10 }
  0x67   :  { %638 = vmatmul.mubr.bf16.gmra.mrb[8].mxu0 %v698_v19 }
  0x68   :  { %641 = vmatprep.mubr.bf16.mxu0 %v699_v20 }
  0x6f   :  { %642 = vmatmul.mubr.bf16.gmra.mrb[12].mxu0 %v700_v21 }
 0x12a   :  { %v631_v25 = vpop.f32.mrb[0].mxu0 }
 0x12b   :  { %v241_v26 = vadd.f32 %v631_v25, %v555_v24  ;;  %v232_v27 = vpop.f32.mrb[1].mxu0 }
 0x12c   :  { %v233_v28 = vadd.f32 %v555_v24, %v232_v27  ;;  %v632_v29 = vpop.f32.mrb[2].mxu0 }
 0x12d   :  { %v244_v30 = vadd.f32 %v632_v29, %v555_v24  ;;  %v235_v31 = vpop.f32.mrb[3].mxu0  ;;  %v297_v33 = vmax.f32 %v241_v26, 0.0 }
 0x12e   :  { %v236_v32 = vadd.f32 %v555_v24, %v235_v31  ;;  %v295_v35 = vmax.f32 %v233_v28, 0.0 }
 0x12f   :  { %v298_v34 = vmax.f32 %v244_v30, 0.0 }
 0x130   :  { %v296_v36 = vmax.f32 %v236_v32, 0.0 }
 0x131   :  { %v312_v37 = vpack.c.bf16 %v298_v34, %v297_v33 }
 0x132   :  { %v635_v38 = vpop.f32.mrb[4].mxu0  ;;  %v311_v39 = vpack.c.bf16 %v296_v36, %v295_v35 }
 0x133   :  { %v257_v40 = vadd.f32 %v635_v38, %v555_v24  ;;  %v248_v41 = vpop.f32.mrb[5].mxu0 }
 0x134   :  { %v249_v42 = vadd.f32 %v555_v24, %v248_v41  ;;  %661 = vmatprep.mubr.bf16.mxu1 %v311_v39  ;;  %v636_v43 = vpop.f32.mrb[6].mxu0 }
 0x135   :  { %v301_v44 = vmax.f32 %v257_v40, 0.0  ;;  %v260_v45 = vadd.f32 %v636_v43, %v555_v24  ;;  %662 = vmatmul.mubr.bf16.vlgmr.msra.gmra.mrb[0].mxu1 %v312_v37  ;;  %v251_v46 = vpop.f32.mrb[7].mxu0 }
 0x136   :  { %v299_v47 = vmax.f32 %v249_v42, 0.0  ;;  %v252_v48 = vadd.f32 %v555_v24, %v251_v46 }
 0x137   :  { %v302_v49 = vmax.f32 %v260_v45, 0.0 }
 0x138   :  { %v300_v50 = vmax.f32 %v252_v48, 0.0 }
 0x139   :  { %v314_v51 = vpack.c.bf16 %v302_v49, %v301_v44 }
 0x13a   :  { %v313_v52 = vpack.c.bf16 %v300_v50, %v299_v47  ;;  %v639_v53 = vpop.f32.mrb[8].mxu0 }
 0x13b   :  { %v273_v54 = vadd.f32 %v639_v53, %v555_v24  ;;  %v264_v55 = vpop.f32.mrb[9].mxu0 }
 0x13c   :  { %665 = vmatprep.mubr.bf16.mxu1 %v313_v52  ;;  %v265_v56 = vadd.f32 %v555_v24, %v264_v55  ;;  %v640_v57 = vpop.f32.mrb[10].mxu0 }
 0x13d   :  { %666 = vmatmul.mubr.bf16.gmra.mrb[4].mxu1 %v314_v51  ;;  %v305_v58 = vmax.f32 %v273_v54, 0.0  ;;  %v276_v59 = vadd.f32 %v640_v57, %v555_v24  ;;  %v267_v60 = vpop.f32.mrb[11].mxu0 }
 0x13e   :  { %v303_v61 = vmax.f32 %v265_v56, 0.0  ;;  %v268_v62 = vadd.f32 %v555_v24, %v267_v60 }
 0x13f   :  { %v306_v63 = vmax.f32 %v276_v59, 0.0 }
 0x140   :  { %v304_v0 = vmax.f32 %v268_v62, 0.0 }
 0x141   :  { %v316_v1 = vpack.c.bf16 %v306_v63, %v305_v58 }
 0x142   :  { %v315_v2 = vpack.c.bf16 %v304_v0, %v303_v61  ;;  %v643_v3 = vpop.f32.mrb[12].mxu0 }
 0x143   :  { %v289_v4 = vadd.f32 %v643_v3, %v555_v24  ;;  %v280_v5 = vpop.f32.mrb[13].mxu0 }
 0x144   :  { %669 = vmatprep.mubr.bf16.mxu1 %v315_v2  ;;  %v281_v6 = vadd.f32 %v555_v24, %v280_v5  ;;  %v644_v7 = vpop.f32.mrb[14].mxu0 }
 0x145   :  { %670 = vmatmul.mubr.bf16.gmra.mrb[8].mxu1 %v316_v1  ;;  %v309_v8 = vmax.f32 %v289_v4, 0.0  ;;  %v292_v9 = vadd.f32 %v644_v7, %v555_v24  ;;  %v283_v10 = vpop.f32.mrb[15].mxu0 }
 0x146   :  { %v307_v11 = vmax.f32 %v281_v6, 0.0  ;;  %v284_v12 = vadd.f32 %v555_v24, %v283_v10 }
 0x147   :  { %v310_v13 = vmax.f32 %v292_v9, 0.0 }
 0x148   :  { %v308_v14 = vmax.f32 %v284_v12, 0.0 }
 0x149   :  { %v318_v15 = vpack.c.bf16 %v310_v13, %v309_v8 }
 0x14a   :  { %v317_v16 = vpack.c.bf16 %v308_v14, %v307_v11 }
 0x14c   :  { %673 = vmatprep.mubr.bf16.mxu1 %v317_v16 }
 0x14d   :  { %674 = vmatmul.mubr.bf16.gmra.mrb[12].mxu1 %v318_v15 }
 0x208   :  { %v663_v18 = vpop.f32.mrb[0].mxu1 }
 0x209   :  { %v424_v19 = vpop.f32.mrb[1].mxu1  ;;  %v433_v26 = vadd.f32 %v663_v18, %v572_v17 }
 0x20a   :  { %v664_v20 = vpop.f32.mrb[2].mxu1  ;;  %v425_v21 = vadd.f32 %v572_v17, %v424_v19 }
 0x20b   :  { %v427_v22 = vpop.f32.mrb[3].mxu1  ;;  %v489_v31 = vmax.f32 %v433_v26, 0.0  ;;  %v436_v32 = vadd.f32 %v664_v20, %v572_v17 }
 0x20c   :  { %v428_v23 = vadd.f32 %v572_v17, %v427_v22  ;;  %v487_v25 = vmax.f32 %v425_v21, 0.0 }
 0x20d   :  { %v490_v33 = vmax.f32 %v436_v32, 0.0 }
 0x20e   :  { %503 = vxpose.xlu0.b32.start [1/16] (narrow) %v487_v25, 16  ;;  %v488_v24 = vmax.f32 %v428_v23, 0.0 }
 0x210   :  { %v667_v27 = vpop.f32.mrb[4].mxu1 }
 0x211   :  { %v440_v28 = vpop.f32.mrb[5].mxu1  ;;  %v449_v41 = vadd.f32 %v667_v27, %v572_v17 }
 0x212   :  { %504 = vxpose.xlu0.b32.cont [2/16] (narrow) %v488_v24, 16  ;;  %v668_v29 = vpop.f32.mrb[6].mxu1  ;;  %v441_v34 = vadd.f32 %v572_v17, %v440_v28 }
 0x213   :  { %v443_v30 = vpop.f32.mrb[7].mxu1  ;;  %v493_v47 = vmax.f32 %v449_v41, 0.0  ;;  %v452_v48 = vadd.f32 %v668_v29, %v572_v17 }
 0x214   :  { %v491_v39 = vmax.f32 %v441_v34, 0.0  ;;  %v444_v40 = vadd.f32 %v572_v17, %v443_v30 }
 0x215   :  { %v494_v49 = vmax.f32 %v452_v48, 0.0 }
 0x216   :  { %505 = vxpose.xlu0.b32.cont [3/16] (narrow) %v489_v31, 16  ;;  %v492_v42 = vmax.f32 %v444_v40, 0.0 }
 0x218   :  { %v671_v35 = vpop.f32.mrb[8].mxu1 }
 0x219   :  { %v456_v36 = vpop.f32.mrb[9].mxu1  ;;  %v465_v53 = vadd.f32 %v671_v35, %v572_v17 }
 0x21a   :  { %506 = vxpose.xlu0.b32.cont [4/16] (narrow) %v490_v33, 16  ;;  %v672_v37 = vpop.f32.mrb[10].mxu1  ;;  %v457_v50 = vadd.f32 %v572_v17, %v456_v36 }
 0x21b   :  { %v459_v38 = vpop.f32.mrb[11].mxu1  ;;  %v497_v55 = vmax.f32 %v465_v53, 0.0  ;;  %v468_v56 = vadd.f32 %v672_v37, %v572_v17 }
 0x21c   :  { %v495_v51 = vmax.f32 %v457_v50, 0.0  ;;  %v460_v52 = vadd.f32 %v572_v17, %v459_v38 }
 0x21d   :  { %v498_v57 = vmax.f32 %v468_v56, 0.0 }
 0x21e   :  { %507 = vxpose.xlu0.b32.cont [5/16] (narrow) %v491_v39, 16  ;;  %v496_v54 = vmax.f32 %v460_v52, 0.0 }
 0x220   :  { %v675_v43 = vpop.f32.mrb[12].mxu1 }
 0x221   :  { %v472_v44 = vpop.f32.mrb[13].mxu1  ;;  %v481_v61 = vadd.f32 %v675_v43, %v572_v17 }
 0x222   :  { %508 = vxpose.xlu0.b32.cont [6/16] (narrow) %v492_v42, 16  ;;  %v676_v45 = vpop.f32.mrb[14].mxu1  ;;  %v473_v58 = vadd.f32 %v572_v17, %v472_v44 }
 0x223   :  { %v475_v46 = vpop.f32.mrb[15].mxu1  ;;  %v501_v63 = vmax.f32 %v481_v61, 0.0  ;;  %v484_v0 = vadd.f32 %v676_v45, %v572_v17 }
 0x224   :  { %v499_v59 = vmax.f32 %v473_v58, 0.0  ;;  %v476_v60 = vadd.f32 %v572_v17, %v475_v46 }
 0x225   :  { %v502_v1 = vmax.f32 %v484_v0, 0.0 }
 0x226   :  { %509 = vxpose.xlu0.b32.cont [7/16] (narrow) %v493_v47, 16  ;;  %v500_v62 = vmax.f32 %v476_v60, 0.0 }
 0x22a   :  { %510 = vxpose.xlu0.b32.cont [8/16] (narrow) %v494_v49, 16 }
 0x22e   :  { %511 = vxpose.xlu0.b32.cont [9/16] (narrow) %v495_v51, 16 }
 0x232   :  { %512 = vxpose.xlu0.b32.cont [10/16] (narrow) %v496_v54, 16 }
 0x236   :  { %513 = vxpose.xlu0.b32.cont [11/16] (narrow) %v497_v55, 16 }
 0x23a   :  { %514 = vxpose.xlu0.b32.cont [12/16] (narrow) %v498_v57, 16 }
 0x23e   :  { %515 = vxpose.xlu0.b32.cont [13/16] (narrow) %v499_v59, 16 }
 0x242   :  { %516 = vxpose.xlu0.b32.cont [14/16] (narrow) %v500_v62, 16 }
 0x246   :  { %517 = vxpose.xlu0.b32.cont [15/16] (narrow) %v501_v63, 16 }
 0x24a   :  { %518 = vxpose.xlu0.b32.end [16/16] (narrow) %v502_v1, 16 }
 0x28e   :  { %v519_v2 = vpop.trf.xlu0 }
 0x28f   :  { %535 = vst [vmem:[#allocation8] sm:$0xff] %v519_v2 }
 0x292   :  { %v520_v3 = vpop.trf.xlu0 }
 0x293   :  { %536 = vst [vmem:[#allocation8 + $0x8] sm:$0xff] %v520_v3 }
 0x294   :  { %786 = shalt.err (!%p783_p0)
}
 0x295   :  { %s787_s10 = scalar_lea.hbm %s916_s5, 256 }
 0x296   :  { %p788_p1 = scmp.ne.s32.totalorder %s916_s5, %s787_s10  ;;  %p791_p2 = scmp.lt.u32.totalorder %s787_s10, %s916_s5 }
 0x298   :  { %p793_p3 = pnand %p791_p2, %p788_p1 }
 0x29a   :  { %796 = shalt.err (!%p793_p3)
}
 0x29b   :  { %s809_s15 = smov 128   ;;  %s810_s16 = smov 8  }
 0x29c   :  { %548 = dma.vmem_to_hbm [thread:$0]  %s543_s6, 256, %s916_s5, [#allocation4], %s809_s15, %s809_s15, %s810_s16  }
 0x29d   :  { %801 = dma.done.wait [#allocation4], 256  }
 0x29e   :  { %802 = vsyncadd [#allocation4], 4294967040 }
 0x29f   :  { %552 = vsyncpa [#allocation3], 1 }
 0x2a0   :  { %553 = vsyncpa [#allocation6], 1 }
 0x2a1   :  { %554 = vsyncpa [#allocation4], 1 }

// kernel: tpu_custom_call.1
= control target key start
LH: loop header
LB: loop body
LE: loop exit
PB: predicated region body
PF: predicated region fallthrough
CT: control target
= control target key end

     0   :  { %10 = vsyncpa [#allocation3], 0  ;;  %s911_s0 = inlined_call_operand.hbm [shape: bf16[128,128], index: 0, kind: input, shape index: {}]   ;;  %s912_s1 = inlined_call_operand.hbm [shape: bf16[128,128], index: 1, kind: input, shape index: {}]   ;;  %s913_s2 = inlined_call_operand.vmem [shape: f32[1,128], index: 2, kind: input, shape index: {}]   ;;  %s914_s3 = inlined_call_operand.hbm [shape: bf16[128,128], index: 3, kind: input, shape index: {}]   ;;  %s915_s4 = inlined_call_operand.vmem [shape: f32[1,128], index: 4, kind: input, shape index: {}]   ;;  %s916_s5 = inlined_call_operand.hbm [shape: f32[16,128], index: 5, kind: output, shape index: {}]  }
   0x1   :  { %11 = vsyncpa [#allocation6], 0 }
   0x2   :  { %12 = vsyncpa [#allocation4], 0  ;;  %s803_s18 = smov [#allocation5]   ;;  %s804_s20 = smov [#allocation2]  }
   0x3   :  { %s30_s19 = sshll.u32 %s803_s18, 4  ;;  %s18_s21 = sshll.u32 %s804_s20, 4  ;;  %s31_s19 = int_to_ptr.vmem [resolvable:$true] %s30_s19  ;;  %s841_s21 = int_to_ptr.vmem [resolvable:$true] %s18_s21 }
   0x4   :  { %s709_s24 = scalar_lea.hbm %s912_s1, 1024 }
   0x5   :  { %p710_p0 = scmp.ne.s32.totalorder %s912_s1, %s709_s24  ;;  %p713_p1 = scmp.lt.u32.totalorder %s709_s24, %s912_s1 }
   0x7   :  { %p715_p2 = pnand %p713_p1, %p710_p0 }
   0x9   :  { %718 = shalt.err (!%p715_p2)
}
   0xa   :  { %s719_s29 = scalar_lea.vmem %s31_s19, 1024  ;;  %p724_p4 = scmp.lt.s32.totalorder %s31_s19, %s31_s19 }
   0xb   :  { %p720_p3 = scmp.ne.s32.totalorder %s31_s19, %s719_s29  ;;  %p725_p5 = scmp.lt.s32.totalorder %s719_s29, %s719_s29 }
   0xd   :  { %p726_p6 = por %p725_p5, %p724_p4 }
   0xf   :  { %p727_p7 = pnand %p726_p6, %p720_p3 }
  0x11   :  { %730 = shalt.err (!%p727_p7)
}
  0x12   :  { %s805_s30 = smov 64   ;;  %s806_s6 = smov 4  }
  0x13   :  { %36 = dma.hbm_to_vmem [thread:$0]  %s912_s1, 1024, %s31_s19, [#allocation6], %s805_s30, %s805_s30, %s806_s6  }
  0x14   :  { %s731_s11 = scalar_lea.hbm %s911_s0, 1024 }
  0x15   :  { %p732_p8 = scmp.ne.s32.totalorder %s911_s0, %s731_s11  ;;  %p735_p9 = scmp.lt.u32.totalorder %s731_s11, %s911_s0 }
  0x17   :  { %p737_p10 = pnand %p735_p9, %p732_p8 }
  0x19   :  { %740 = shalt.err (!%p737_p10)
}
  0x1a   :  { %s741_s16 = scalar_lea.vmem %s841_s21, 1024  ;;  %p746_p12 = scmp.lt.s32.totalorder %s841_s21, %s841_s21 }
  0x1b   :  { %p742_p11 = scmp.ne.s32.totalorder %s841_s21, %s741_s16  ;;  %p747_p13 = scmp.lt.s32.totalorder %s741_s16, %s741_s16 }
  0x1d   :  { %p748_p0 = por %p747_p13, %p746_p12 }
  0x1f   :  { %p749_p1 = pnand %p748_p0, %p742_p11 }
  0x21   :  { %752 = shalt.err (!%p749_p1)
}
  0x22   :  { %24 = dma.hbm_to_vmem [thread:$0]  %s911_s0, 1024, %s841_s21, [#allocation3], %s805_s30, %s805_s30, %s806_s6  }
  0x23   :  { %s807_s18 = smov [#allocation7]   ;;  %s753_s23 = scalar_lea.hbm %s914_s3, 1024 }
  0x24   :  { %s44_s19 = sshll.u32 %s807_s18, 4  ;;  %p754_p2 = scmp.ne.s32.totalorder %s914_s3, %s753_s23  ;;  %s45_s19 = int_to_ptr.vmem [resolvable:$true] %s44_s19 }
  0x25   :  { %p757_p3 = scmp.lt.u32.totalorder %s753_s23, %s914_s3 }
  0x27   :  { %p759_p4 = pnand %p757_p3, %p754_p2 }
  0x29   :  { %762 = shalt.err (!%p759_p4)
}
  0x2a   :  { %s763_s28 = scalar_lea.vmem %s45_s19, 1024  ;;  %p768_p6 = scmp.lt.s32.totalorder %s45_s19, %s45_s19 }
  0x2b   :  { %p764_p5 = scmp.ne.s32.totalorder %s45_s19, %s763_s28  ;;  %p769_p7 = scmp.lt.s32.totalorder %s763_s28, %s763_s28 }
  0x2d   :  { %p770_p8 = por %p769_p7, %p768_p6 }
  0x2f   :  { %p771_p9 = pnand %p770_p8, %p764_p5 }
  0x31   :  { %774 = shalt.err (!%p771_p9)
}
  0x32   :  { %50 = dma.hbm_to_vmem [thread:$0]  %s914_s3, 1024, %s45_s19, [#allocation6], %s805_s30, %s805_s30, %s806_s6  }
  0x33   :  { %797 = dma.done.wait [#allocation3], 1024  }
  0x34   :  { %798 = vsyncadd [#allocation3], 4294966272 }
  0x35   :  { %799 = dma.done.wait [#allocation6], 2048  }
  0x36   :  { %800 = vsyncadd [#allocation6], 4294965248  ;;  %v685_v0 = vld [vmem:[#allocation5] sm:$0xff]   ;;  %v686_v1 = vld [vmem:[#allocation5 + $0x8] sm:$0xff]  }
  0x37   :  { %613 = vmatprep.subr.bf16.mxu0 %v685_v0  ;;  %v687_v2 = vld [vmem:[#allocation5 + $0x10] sm:$0xff]   ;;  %v688_v3 = vld [vmem:[#allocation5 + $0x18] sm:$0xff]   ;;  %v693_v4 = vld [vmem:[#allocation2] sm:$0xff]  }
  0x38   :  { %614 = vmatpush3.bf16.msra.mxu0 %v685_v0  ;;  %629 = vmatprep.mubr.bf16.mxu0 %v693_v4  ;;  %v689_v5 = vld [vmem:[#allocation5 + $0x20] sm:$0xff]   ;;  %v690_v6 = vld [vmem:[#allocation5 + $0x28] sm:$0xff]   ;;  %v691_v9 = vld [vmem:[#allocation5 + $0x30] sm:$0xff]  }
  0x39   :  { %615 = vmatprep.subr.bf16.mxu0 %v686_v1  ;;  %v701_v7 = vld [vmem:[#allocation7] sm:$0xff]   ;;  %v702_v8 = vld [vmem:[#allocation7 + $0x8] sm:$0xff]   ;;  %v703_v10 = vld [vmem:[#allocation7 + $0x10] sm:$0xff]  }
  0x3a   :  { %645 = vmatprep.subr.bf16.mxu1 %v701_v7  ;;  %v692_v11 = vld [vmem:[#allocation5 + $0x38] sm:$0xff]   ;;  %v705_v13 = vld [vmem:[#allocation7 + $0x20] sm:$0xff]   ;;  %v694_v14 = vld [vmem:[#allocation2 + $0x8] sm:$0xff]  }
  0x3b   :  { %646 = vmatpush3.bf16.msra.mxu1 %v701_v7  ;;  %v704_v12 = vld [vmem:[#allocation7 + $0x18] sm:$0xff]   ;;  %v695_v15 = vld [vmem:[#allocation2 + $0x10] sm:$0xff]   ;;  %v706_v16 = vld [vmem:[#allocation7 + $0x28] sm:$0xff]  }
  0x3c   :  { %616 = vmatpush3.bf16.msra.mxu0 %v686_v1  ;;  %647 = vmatprep.subr.bf16.mxu1 %v702_v8  ;;  %v696_v17 = vld [vmem:[#allocation2 + $0x18] sm:$0xff]   ;;  %v697_v18 = vld [vmem:[#allocation2 + $0x20] sm:$0xff]   ;;  %v698_v19 = vld [vmem:[#allocation2 + $0x28] sm:$0xff]  }
  0x3d   :  { %617 = vmatprep.subr.bf16.mxu0 %v687_v2  ;;  %v699_v20 = vld [vmem:[#allocation2 + $0x30] sm:$0xff]   ;;  %v700_v21 = vld [vmem:[#allocation2 + $0x38] sm:$0xff]   ;;  %v555_v24 = vld [vmem:[%s913_s2] ss:$0 sm:$0xff] }
  0x3e   :  { %v707_v22 = vld [vmem:[#allocation7 + $0x30] sm:$0xff]   ;;  %v708_v23 = vld [vmem:[#allocation7 + $0x38] sm:$0xff]  }
  0x3f   :  { %648 = vmatpush3.bf16.msra.mxu1 %v702_v8 }
  0x40   :  { %618 = vmatpush3.bf16.msra.mxu0 %v687_v2  ;;  %649 = vmatprep.subr.bf16.mxu1 %v703_v10 }
  0x41   :  { %619 = vmatprep.subr.bf16.mxu0 %v688_v3 }
  0x43   :  { %650 = vmatpush3.bf16.msra.mxu1 %v703_v10 }
  0x44   :  { %620 = vmatpush3.bf16.msra.mxu0 %v688_v3  ;;  %651 = vmatprep.subr.bf16.mxu1 %v704_v12 }
  0x45   :  { %621 = vmatprep.subr.bf16.mxu0 %v689_v5 }
  0x47   :  { %652 = vmatpush3.bf16.msra.mxu1 %v704_v12 }
  0x48   :  { %622 = vmatpush3.bf16.msra.mxu0 %v689_v5  ;;  %653 = vmatprep.subr.bf16.mxu1 %v705_v13 }
  0x49   :  { %623 = vmatprep.subr.bf16.mxu0 %v690_v6 }
  0x4b   :  { %654 = vmatpush3.bf16.msra.mxu1 %v705_v13 }
  0x4c   :  { %624 = vmatpush3.bf16.msra.mxu0 %v690_v6  ;;  %655 = vmatprep.subr.bf16.mxu1 %v706_v16 }
  0x4d   :  { %625 = vmatprep.subr.bf16.mxu0 %v691_v9 }
  0x4f   :  { %656 = vmatpush3.bf16.msra.mxu1 %v706_v16 }
  0x50   :  { %626 = vmatpush3.bf16.msra.mxu0 %v691_v9  ;;  %657 = vmatprep.subr.bf16.mxu1 %v707_v22 }
  0x51   :  { %627 = vmatprep.subr.bf16.mxu0 %v692_v11 }
  0x53   :  { %658 = vmatpush3.bf16.msra.mxu1 %v707_v22 }
  0x54   :  { %628 = vmatpush3.bf16.msra.mxu0 %v692_v11  ;;  %659 = vmatprep.subr.bf16.mxu1 %v708_v23 }
  0x57   :  { %630 = vmatmul.mubr.bf16.vlgmr.msra.gmra.mrb[0].mxu0 %v694_v14  ;;  %660 = vmatpush3.bf16.msra.mxu1 %v708_v23 }
  0x58   :  { %633 = vmatprep.mubr.bf16.mxu0 %v695_v15 }
  0x5f   :  { %634 = vmatmul.mubr.bf16.gmra.mrb[4].mxu0 %v696_v17  ;;  %v572_v17 = vld [vmem:[%s915_s4] ss:$0 sm:$0xff]  ;;  %s808_s4 = smov [#allocation8]  }
  0x60   :  { %637 = vmatprep.mubr.bf16.mxu0 %v697_v18  ;;  %s542_s6 = sshll.u32 %s808_s4, 4  ;;  %s543_s6 = int_to_ptr.vmem [resolvable:$true] %s542_s6 }
  0x61   :  { %s775_s7 = scalar_lea.vmem %s543_s6, 256  ;;  %p780_p11 = scmp.lt.s32.totalorder %s543_s6, %s543_s6 }
  0x62   :  { %p776_p10 = scmp.ne.s32.totalorder %s543_s6, %s775_s7  ;;  %p781_p12 = scmp.lt.s32.totalorder %s775_s7, %s775_s7 }
  0x64   :  { %p782_p13 = por %p781_p12, %p780_p11 }
  0x66   :  { %p783_p0 = pnand %p782_p13, %p776_p10 }
  0x67   :  { %638 = vmatmul.mubr.bf16.gmra.mrb[8].mxu0 %v698_v19 }
  0x68   :  { %641 = vmatprep.mubr.bf16.mxu0 %v699_v20 }
  0x6f   :  { %642 = vmatmul.mubr.bf16.gmra.mrb[12].mxu0 %v700_v21 }
 0x12a   :  { %v631_v25 = vpop.f32.mrb[0].mxu0 }
 0x12b   :  { %v241_v26 = vadd.f32 %v631_v25, %v555_v24  ;;  %v232_v27 = vpop.f32.mrb[1].mxu0 }
 0x12c   :  { %v233_v28 = vadd.f32 %v555_v24, %v232_v27  ;;  %v632_v29 = vpop.f32.mrb[2].mxu0 }
 0x12d   :  { %v244_v30 = vadd.f32 %v632_v29, %v555_v24  ;;  %v235_v31 = vpop.f32.mrb[3].mxu0  ;;  %v297_v33 = vmax.f32 %v241_v26, 0.0 }
 0x12e   :  { %v236_v32 = vadd.f32 %v555_v24, %v235_v31  ;;  %v295_v35 = vmax.f32 %v233_v28, 0.0 }
 0x12f   :  { %v298_v34 = vmax.f32 %v244_v30, 0.0 }
 0x130   :  { %v296_v36 = vmax.f32 %v236_v32, 0.0 }
 0x131   :  { %v312_v37 = vpack.c.bf16 %v298_v34, %v297_v33 }
 0x132   :  { %v635_v38 = vpop.f32.mrb[4].mxu0  ;;  %v311_v39 = vpack.c.bf16 %v296_v36, %v295_v35 }
 0x133   :  { %v257_v40 = vadd.f32 %v635_v38, %v555_v24  ;;  %v248_v41 = vpop.f32.mrb[5].mxu0 }
 0x134   :  { %v249_v42 = vadd.f32 %v555_v24, %v248_v41  ;;  %661 = vmatprep.mubr.bf16.mxu1 %v311_v39  ;;  %v636_v43 = vpop.f32.mrb[6].mxu0 }
 0x135   :  { %v301_v44 = vmax.f32 %v257_v40, 0.0  ;;  %v260_v45 = vadd.f32 %v636_v43, %v555_v24  ;;  %662 = vmatmul.mubr.bf16.vlgmr.msra.gmra.mrb[0].mxu1 %v312_v37  ;;  %v251_v46 = vpop.f32.mrb[7].mxu0 }
 0x136   :  { %v299_v47 = vmax.f32 %v249_v42, 0.0  ;;  %v252_v48 = vadd.f32 %v555_v24, %v251_v46 }
 0x137   :  { %v302_v49 = vmax.f32 %v260_v45, 0.0 }
 0x138   :  { %v300_v50 = vmax.f32 %v252_v48, 0.0 }
 0x139   :  { %v314_v51 = vpack.c.bf16 %v302_v49, %v301_v44 }
 0x13a   :  { %v313_v52 = vpack.c.bf16 %v300_v50, %v299_v47  ;;  %v639_v53 = vpop.f32.mrb[8].mxu0 }
 0x13b   :  { %v273_v54 = vadd.f32 %v639_v53, %v555_v24  ;;  %v264_v55 = vpop.f32.mrb[9].mxu0 }
 0x13c   :  { %665 = vmatprep.mubr.bf16.mxu1 %v313_v52  ;;  %v265_v56 = vadd.f32 %v555_v24, %v264_v55  ;;  %v640_v57 = vpop.f32.mrb[10].mxu0 }
 0x13d   :  { %666 = vmatmul.mubr.bf16.gmra.mrb[4].mxu1 %v314_v51  ;;  %v305_v58 = vmax.f32 %v273_v54, 0.0  ;;  %v276_v59 = vadd.f32 %v640_v57, %v555_v24  ;;  %v267_v60 = vpop.f32.mrb[11].mxu0 }
 0x13e   :  { %v303_v61 = vmax.f32 %v265_v56, 0.0  ;;  %v268_v62 = vadd.f32 %v555_v24, %v267_v60 }
 0x13f   :  { %v306_v63 = vmax.f32 %v276_v59, 0.0 }
 0x140   :  { %v304_v0 = vmax.f32 %v268_v62, 0.0 }
 0x141   :  { %v316_v1 = vpack.c.bf16 %v306_v63, %v305_v58 }
 0x142   :  { %v315_v2 = vpack.c.bf16 %v304_v0, %v303_v61  ;;  %v643_v3 = vpop.f32.mrb[12].mxu0 }
 0x143   :  { %v289_v4 = vadd.f32 %v643_v3, %v555_v24  ;;  %v280_v5 = vpop.f32.mrb[13].mxu0 }
 0x144   :  { %669 = vmatprep.mubr.bf16.mxu1 %v315_v2  ;;  %v281_v6 = vadd.f32 %v555_v24, %v280_v5  ;;  %v644_v7 = vpop.f32.mrb[14].mxu0 }
 0x145   :  { %670 = vmatmul.mubr.bf16.gmra.mrb[8].mxu1 %v316_v1  ;;  %v309_v8 = vmax.f32 %v289_v4, 0.0  ;;  %v292_v9 = vadd.f32 %v644_v7, %v555_v24  ;;  %v283_v10 = vpop.f32.mrb[15].mxu0 }
 0x146   :  { %v307_v11 = vmax.f32 %v281_v6, 0.0  ;;  %v284_v12 = vadd.f32 %v555_v24, %v283_v10 }
 0x147   :  { %v310_v13 = vmax.f32 %v292_v9, 0.0 }
 0x148   :  { %v308_v14 = vmax.f32 %v284_v12, 0.0 }
 0x149   :  { %v318_v15 = vpack.c.bf16 %v310_v13, %v309_v8 }
 0x14a   :  { %v317_v16 = vpack.c.bf16 %v308_v14, %v307_v11 }
 0x14c   :  { %673 = vmatprep.mubr.bf16.mxu1 %v317_v16 }
 0x14d   :  { %674 = vmatmul.mubr.bf16.gmra.mrb[12].mxu1 %v318_v15 }
 0x208   :  { %v663_v18 = vpop.f32.mrb[0].mxu1 }
 0x209   :  { %v424_v19 = vpop.f32.mrb[1].mxu1  ;;  %v433_v26 = vadd.f32 %v663_v18, %v572_v17 }
 0x20a   :  { %v664_v20 = vpop.f32.mrb[2].mxu1  ;;  %v425_v21 = vadd.f32 %v572_v17, %v424_v19 }
 0x20b   :  { %v427_v22 = vpop.f32.mrb[3].mxu1  ;;  %v489_v31 = vmax.f32 %v433_v26, 0.0  ;;  %v436_v32 = vadd.f32 %v664_v20, %v572_v17 }
 0x20c   :  { %v428_v23 = vadd.f32 %v572_v17, %v427_v22  ;;  %v487_v25 = vmax.f32 %v425_v21, 0.0 }
 0x20d   :  { %v490_v33 = vmax.f32 %v436_v32, 0.0 }
 0x20e   :  { %503 = vxpose.xlu0.b32.start [1/16] (narrow) %v487_v25, 16  ;;  %v488_v24 = vmax.f32 %v428_v23, 0.0 }
 0x210   :  { %v667_v27 = vpop.f32.mrb[4].mxu1 }
 0x211   :  { %v440_v28 = vpop.f32.mrb[5].mxu1  ;;  %v449_v41 = vadd.f32 %v667_v27, %v572_v17 }
 0x212   :  { %504 = vxpose.xlu0.b32.cont [2/16] (narrow) %v488_v24, 16  ;;  %v668_v29 = vpop.f32.mrb[6].mxu1  ;;  %v441_v34 = vadd.f32 %v572_v17, %v440_v28 }
 0x213   :  { %v443_v30 = vpop.f32.mrb[7].mxu1  ;;  %v493_v47 = vmax.f32 %v449_v41, 0.0  ;;  %v452_v48 = vadd.f32 %v668_v29, %v572_v17 }
 0x214   :  { %v491_v39 = vmax.f32 %v441_v34, 0.0  ;;  %v444_v40 = vadd.f32 %v572_v17, %v443_v30 }
 0x215   :  { %v494_v49 = vmax.f32 %v452_v48, 0.0 }
 0x216   :  { %505 = vxpose.xlu0.b32.cont [3/16] (narrow) %v489_v31, 16  ;;  %v492_v42 = vmax.f32 %v444_v40, 0.0 }
 0x218   :  { %v671_v35 = vpop.f32.mrb[8].mxu1 }
 0x219   :  { %v456_v36 = vpop.f32.mrb[9].mxu1  ;;  %v465_v53 = vadd.f32 %v671_v35, %v572_v17 }
 0x21a   :  { %506 = vxpose.xlu0.b32.cont [4/16] (narrow) %v490_v33, 16  ;;  %v672_v37 = vpop.f32.mrb[10].mxu1  ;;  %v457_v50 = vadd.f32 %v572_v17, %v456_v36 }
 0x21b   :  { %v459_v38 = vpop.f32.mrb[11].mxu1  ;;  %v497_v55 = vmax.f32 %v465_v53, 0.0  ;;  %v468_v56 = vadd.f32 %v672_v37, %v572_v17 }
 0x21c   :  { %v495_v51 = vmax.f32 %v457_v50, 0.0  ;;  %v460_v52 = vadd.f32 %v572_v17, %v459_v38 }
 0x21d   :  { %v498_v57 = vmax.f32 %v468_v56, 0.0 }
 0x21e   :  { %507 = vxpose.xlu0.b32.cont [5/16] (narrow) %v491_v39, 16  ;;  %v496_v54 = vmax.f32 %v460_v52, 0.0 }
 0x220   :  { %v675_v43 = vpop.f32.mrb[12].mxu1 }
 0x221   :  { %v472_v44 = vpop.f32.mrb[13].mxu1  ;;  %v481_v61 = vadd.f32 %v675_v43, %v572_v17 }
 0x222   :  { %508 = vxpose.xlu0.b32.cont [6/16] (narrow) %v492_v42, 16  ;;  %v676_v45 = vpop.f32.mrb[14].mxu1  ;;  %v473_v58 = vadd.f32 %v572_v17, %v472_v44 }
 0x223   :  { %v475_v46 = vpop.f32.mrb[15].mxu1  ;;  %v501_v63 = vmax.f32 %v481_v61, 0.0  ;;  %v484_v0 = vadd.f32 %v676_v45, %v572_v17 }
 0x224   :  { %v499_v59 = vmax.f32 %v473_v58, 0.0  ;;  %v476_v60 = vadd.f32 %v572_v17, %v475_v46 }
 0x225   :  { %v502_v1 = vmax.f32 %v484_v0, 0.0 }
 0x226   :  { %509 = vxpose.xlu0.b32.cont [7/16] (narrow) %v493_v47, 16  ;;  %v500_v62 = vmax.f32 %v476_v60, 0.0 }
 0x22a   :  { %510 = vxpose.xlu0.b32.cont [8/16] (narrow) %v494_v49, 16 }
 0x22e   :  { %511 = vxpose.xlu0.b32.cont [9/16] (narrow) %v495_v51, 16 }
 0x232   :  { %512 = vxpose.xlu0.b32.cont [10/16] (narrow) %v496_v54, 16 }
 0x236   :  { %513 = vxpose.xlu0.b32.cont [11/16] (narrow) %v497_v55, 16 }
 0x23a   :  { %514 = vxpose.xlu0.b32.cont [12/16] (narrow) %v498_v57, 16 }
 0x23e   :  { %515 = vxpose.xlu0.b32.cont [13/16] (narrow) %v499_v59, 16 }
 0x242   :  { %516 = vxpose.xlu0.b32.cont [14/16] (narrow) %v500_v62, 16 }
 0x246   :  { %517 = vxpose.xlu0.b32.cont [15/16] (narrow) %v501_v63, 16 }
 0x24a   :  { %518 = vxpose.xlu0.b32.end [16/16] (narrow) %v502_v1, 16 }
 0x28e   :  { %v519_v2 = vpop.trf.xlu0 }
 0x28f   :  { %535 = vst [vmem:[#allocation8] sm:$0xff] %v519_v2 }
 0x292   :  { %v520_v3 = vpop.trf.xlu0 }
 0x293   :  { %536 = vst [vmem:[#allocation8 + $0x8] sm:$0xff] %v520_v3 }
 0x294   :  { %786 = shalt.err (!%p783_p0)
}
 0x295   :  { %s787_s10 = scalar_lea.hbm %s916_s5, 256 }
 0x296   :  { %p788_p1 = scmp.ne.s32.totalorder %s916_s5, %s787_s10  ;;  %p791_p2 = scmp.lt.u32.totalorder %s787_s10, %s916_s5 }
 0x298   :  { %p793_p3 = pnand %p791_p2, %p788_p1 }
 0x29a   :  { %796 = shalt.err (!%p793_p3)
}
 0x29b   :  { %s809_s15 = smov 128   ;;  %s810_s16 = smov 8  }
 0x29c   :  { %548 = dma.vmem_to_hbm [thread:$0]  %s543_s6, 256, %s916_s5, [#allocation4], %s809_s15, %s809_s15, %s810_s16  }
 0x29d   :  { %801 = dma.done.wait [#allocation4], 256  }
 0x29e   :  { %802 = vsyncadd [#allocation4], 4294967040 }
 0x29f   :  { %552 = vsyncpa [#allocation3], 1 }
 0x2a0   :  { %553 = vsyncpa [#allocation6], 1 }
 0x2a1   :  { %554 = vsyncpa [#allocation4], 1 }

</bundles_post_ra>
